<compile_context>
chip_gen: v5e
topology: v5e:2x2
jax: 0.10.0
libtpu: 0.0.40
codegen_flags: <defaults>
</compile_context>

<pallas_src>
import jax
import jax.numpy as jnp
from jax.experimental import pallas as pl
from jax.experimental.pallas import tpu as pltpu


def _round_up(v, m):
    return ((v + m - 1) // m) * m


def _vmem_capacity_bytes():
    """Physical VMEM of this TPU generation (fallback: 128 MiB, v5e/v6e)."""
    default = 128 * 1024 * 1024
    try:
        info = pltpu.get_tpu_info()
    except Exception:
        return default
    for name in ("vmem_capacity_bytes", "vmem_size_bytes", "vmem_bytes"):
        v = getattr(info, name, None)
        if v:
            return int(v)
    return default


def _make_kernel(tf, acc_w, n_feature, needs_f_mask, single_k):
    """Build the kernel with static tile parameters closed over."""

    def kernel(x_ref, w_ref, b_ref, o_ref, acc_ref):
        # x_ref:   (TB, TF)   input tile (input dtype), streamed
        # w_ref:   (1, FP)    resident lane-dense weight row (input dtype)
        # b_ref:   (1,)       bias scalar in SMEM (f32)
        # o_ref:   (TB, 1)    f32 output block, resident across the k axis
        # acc_ref: (TB, ACC_W) f32 lane-dense accumulator scratch
        k = pl.program_id(1)

        @pl.when(k == 0)
        def _init():
            acc_ref[...] = jnp.zeros_like(acc_ref)

        # Active chunk of the resident weight row.
        if single_k:
            w = w_ref[...]
        else:
            start = pl.multiple_of(k * tf, 128)
            w = w_ref[:, pl.ds(start, tf)]
        w = w.astype(jnp.float32)

        x = x_ref[...].astype(jnp.float32)
        xw = x * w  # VPU multiply, broadcast (1, TF) over rows

        if needs_f_mask:
            # Feature tail of the last k tile is out-of-bounds garbage in the
            # VMEM buffer -> zero it with a select (NaN-safe) before reducing.
            lane = jax.lax.broadcasted_iota(jnp.int32, (1, tf), 1)
            valid = (k * tf + lane) < n_feature
            xw = jnp.where(valid, xw, 0.0)

        # Fold TF lanes into the ACC_W-wide accumulator with plain VPU adds
        # (no per-step XLU reduce, no per-step masked (TB,1) store).
        part = xw[:, 0:acc_w]
        for c in range(1, tf // acc_w):
            part = part + xw[:, c * acc_w:(c + 1) * acc_w]
        acc_ref[...] += part

        @pl.when(k == pl.num_programs(1) - 1)
        def _finalize():
            o_ref[...] = (
                jnp.sum(acc_ref[...], axis=-1, keepdims=True) + b_ref[0]
            ).astype(o_ref.dtype)

    return kernel


def linear_net_forward(x, weight, bias, *, tile_b=None, tile_f=None):
    """Pallas implementation of LinearNet.forward: y = x @ W.T + b.

    x:      (batch, n_feature)
    weight: (1, n_feature)   (PyTorch nn.Linear layout, kept lane-dense)
    bias:   (1,)
    returns (batch, 1) float32
    """
    batch, n_feature = x.shape
    assert weight.shape == (1, n_feature)

    b = jnp.asarray(bias, jnp.float32).reshape((1,))
    itemsize = jnp.dtype(x.dtype).itemsize

    # ---- generation-aware VMEM budget & tile sizing ------------------------
    vmem_cap = _vmem_capacity_bytes()
    vmem_limit = min(64 * 1024 * 1024, vmem_cap // 2)  # 64 MiB v5e/v6e, 32 MiB v7x
    block_budget = vmem_limit // 4                     # x block (double-buffered) + headroom

    if tile_f is None:
        tile_f = 2048
    else:
        tile_f = max(128, _round_up(tile_f, 128))

    if n_feature > tile_f:
        tf = tile_f                    # multiple of 128 by construction
    else:
        tf = n_feature                 # full dim -> no divisibility constraint

    if tile_b is None:
        tile_b = block_budget // max(tf * itemsize, 1)
        tile_b = max(8, min(4096, (tile_b // 8) * 8))
    else:
        tile_b = max(8, _round_up(tile_b, 8))

    if batch > tile_b:
        tb = tile_b
    elif batch >= 16:
        # Guarantee >=2 batch tiles so both TensorCores of dual-core chips
        # (v7x) get work; costs one extra ~0.35us step on single-core chips.
        tb = _round_up(pl.cdiv(batch, 2), 8)
        if tb >= batch:
            tb = batch
    else:
        tb = batch

    grid_b = pl.cdiv(batch, tb)
    grid_k = pl.cdiv(n_feature, tf)

    # Weight row stays fully resident in VMEM.  Pad it (tiny: F*4 bytes) so
    # the in-kernel chunk slice stays in bounds.  x itself is NOT padded.
    fp = grid_k * tf
    wp = weight if fp == n_feature else jnp.pad(weight, ((0, 0), (0, fp - n_feature)))

    needs_f_mask = (n_feature % tf) != 0
    single_k = grid_k == 1
    acc_w = 128 if (tf % 128 == 0) else tf

    # Make sure the scoped VMEM limit covers the chosen tiles.
    x_block_bytes = tb * tf * itemsize
    min_needed = 3 * x_block_bytes + fp * 8 + tb * (acc_w + 2) * 8 + (2 << 20)
    vmem_limit = int(min(vmem_cap, max(vmem_limit, min_needed)))

    kernel = _make_kernel(tf, acc_w, n_feature, needs_f_mask, single_k)

    cost = pl.CostEstimate(
        flops=2 * batch * n_feature,
        transcendentals=0,
        bytes_accessed=int(batch * n_feature * itemsize
                           + fp * jnp.dtype(weight.dtype).itemsize
                           + batch * 4 + 4),
    )

    out = pl.pallas_call(
        kernel,
        out_shape=jax.ShapeDtypeStruct((batch, 1), jnp.float32),
        grid_spec=pltpu.PrefetchScalarGridSpec(
            num_scalar_prefetch=0,
            grid=(grid_b, grid_k),
            in_specs=[
                pl.BlockSpec((tb, tf), lambda i, k: (i, k)),        # x tile (streamed)
                pl.BlockSpec((1, fp), lambda i, k: (0, 0)),         # resident weight row
                pl.BlockSpec(memory_space=pltpu.MemorySpace.SMEM),  # bias scalar
            ],
            out_specs=pl.BlockSpec((tb, 1), lambda i, k: (i, 0)),
            scratch_shapes=[pltpu.VMEM((tb, acc_w), jnp.float32)],
        ),
        compiler_params=pltpu.CompilerParams(
            dimension_semantics=("parallel", "arbitrary"),
            vmem_limit_bytes=vmem_limit,
        ),
        cost_estimate=cost,
    )(x, wp, b)

    return out


if __name__ == "__main__":
    key = jax.random.PRNGKey(0)
    kx, kw, kb = jax.random.split(key, 3)

    # Small shapes consistent with nn.Linear(n_feature, 1).
    batch, n_feature = 8, 32
    x = jax.random.normal(kx, (batch, n_feature), dtype=jnp.float32)
    weight = jax.random.normal(kw, (1, n_feature), dtype=jnp.float32) * 0.1
    bias = jax.random.normal(kb, (1,), dtype=jnp.float32) * 0.1

    y = jax.block_until_ready(linear_net_forward(x, weight, bias))
    y_ref = x @ weight.T + bias
    assert y.shape == (batch, 1)
    assert jnp.allclose(y, y_ref, atol=1e-5, rtol=1e-5)

    # Exercise the tiled, non-aligned path: multiple batch tiles, multiple
    # feature tiles, feature tail mask, partial last batch block.
    b2, f2 = 20, 200
    x2 = jax.random.normal(kx, (b2, f2), dtype=jnp.float32)
    w2 = jax.random.normal(kw, (1, f2), dtype=jnp.float32) * 0.05
    bias2 = jax.random.normal(kb, (1,), dtype=jnp.float32) * 0.05
    y2 = jax.block_until_ready(
        linear_net_forward(x2, w2, bias2, tile_b=8, tile_f=128)
    )
    y2_ref = x2 @ w2.T + bias2
    assert y2.shape == (b2, 1)
    assert jnp.allclose(y2, y2_ref, atol=1e-4, rtol=1e-4)

    print("KERNEL_OK")
</pallas_src>

<mosaic_0001>
module attributes {stable_mosaic.version = 11 : i64} {
  func.func @kernel(%arg0: i32, %arg1: i32, %arg2: memref<8x32xf32, #tpu.memory_space<vmem>>, %arg3: memref<1x32xf32, #tpu.memory_space<vmem>>, %arg4: memref<1xf32, #tpu.memory_space<smem>>, %arg5: memref<8x1xf32, #tpu.memory_space<vmem>>, %arg6: memref<8x32xf32, #tpu.memory_space<vmem>>) attributes {dimension_semantics = [#tpu.dimension_semantics<parallel>, #tpu.dimension_semantics<arbitrary>], iteration_bounds = array<i64: 1, 1>, scalar_prefetch = 0 : i64, scratch_operands = 1 : i64, tpu.core_type = #tpu.core_type<tc>, window_params = [{transform_indices = @transform_0, window_bounds = array<i64: 8, 32>}, {pipeline_mode = #tpu.pipeline_mode<synchronous>, transform_indices = @transform_1, window_bounds = array<i64: 1, 32>}, {transform_indices = @transform_2, window_bounds = array<i64: 1>}, {transform_indices = @transform_3, window_bounds = array<i64: 8, 1>}]} {
    %c0_i32 = arith.constant 0 : i32
    %0 = arith.cmpi eq, %arg1, %c0_i32 : i32
    %1 = arith.extui %0 : i1 to i32
    %c0_i32_0 = arith.constant 0 : i32
    %2 = arith.cmpi ne, %1, %c0_i32_0 : i32
    scf.if %2 {
      %cst = arith.constant 0.000000e+00 : f32
      %13 = vector.broadcast %cst : f32 to vector<8x32xf32>
      %c0_10 = arith.constant 0 : index
      %c0_11 = arith.constant 0 : index
      %14 = vector.load %arg6[%c0_10, %c0_11] : memref<8x32xf32, #tpu.memory_space<vmem>>, vector<8x32xf32>
      tpu.vector_store %arg6[%c0_10, %c0_11], %13 {strides = array<i32>} : memref<8x32xf32, #tpu.memory_space<vmem>>, vector<8x32xf32>,
    } else {
    }
    %c0 = arith.constant 0 : index
    %c0_1 = arith.constant 0 : index
    %3 = vector.load %arg3[%c0, %c0_1] : memref<1x32xf32, #tpu.memory_space<vmem>>, vector<1x32xf32>
    %c0_2 = arith.constant 0 : index
    %c0_3 = arith.constant 0 : index
    %4 = vector.load %arg2[%c0_2, %c0_3] : memref<8x32xf32, #tpu.memory_space<vmem>>, vector<8x32xf32>
    %5 = vector.broadcast %3 : vector<1x32xf32> to vector<8x32xf32>
    %6 = arith.mulf %4, %5 : vector<8x32xf32>
    %c0_4 = arith.constant 0 : index
    %c0_5 = arith.constant 0 : index
    %7 = vector.load %arg6[%c0_4, %c0_5] : memref<8x32xf32, #tpu.memory_space<vmem>>, vector<8x32xf32>
    %8 = arith.addf %7, %6 : vector<8x32xf32>
    %c0_6 = arith.constant 0 : index
    %c0_7 = arith.constant 0 : index
    %9 = vector.load %arg6[%c0_6, %c0_7] : memref<8x32xf32, #tpu.memory_space<vmem>>, vector<8x32xf32>
    tpu.vector_store %arg6[%c0_6, %c0_7], %8 {strides = array<i32>} : memref<8x32xf32, #tpu.memory_space<vmem>>, vector<8x32xf32>,
    %c0_i32_8 = arith.constant 0 : i32
    %10 = arith.cmpi eq, %arg1, %c0_i32_8 : i32
    %11 = arith.extui %10 : i1 to i32
    %c0_i32_9 = arith.constant 0 : i32
    %12 = arith.cmpi ne, %11, %c0_i32_9 : i32
    scf.if %12 {
      %c0_10 = arith.constant 0 : index
      %c0_11 = arith.constant 0 : index
      %13 = vector.load %arg6[%c0_10, %c0_11] : memref<8x32xf32, #tpu.memory_space<vmem>>, vector<8x32xf32>
      %cst = arith.constant dense<0.000000e+00> : vector<8xf32>
      %14 = vector.multi_reduction <add>, %13, %cst [1] : vector<8x32xf32> to vector<8xf32>
      %15 = vector.shape_cast %14 : vector<8xf32> to vector<8x1xf32>
      %c0_12 = arith.constant 0 : index
      %16 = memref.load %arg4[%c0_12] : memref<1xf32, #tpu.memory_space<smem>>
      %17 = vector.broadcast %16 : f32 to vector<8x1xf32>
      %18 = arith.addf %15, %17 : vector<8x1xf32>
      %c0_13 = arith.constant 0 : index
      %c0_14 = arith.constant 0 : index
      %19 = vector.load %arg5[%c0_13, %c0_14] : memref<8x1xf32, #tpu.memory_space<vmem>>, vector<8x1xf32>
      tpu.vector_store %arg5[%c0_13, %c0_14], %18 {strides = array<i32>} : memref<8x1xf32, #tpu.memory_space<vmem>>, vector<8x1xf32>,
    } else {
    }
    return
  }
  func.func @transform_0(%arg0: i32, %arg1: i32) -> (i32, i32) {
    %c0_i32 = arith.constant 0 : i32
    return %arg0, %arg1 : i32, i32
  }
  func.func @transform_1(%arg0: i32, %arg1: i32) -> (i32, i32) {
    %c0_i32 = arith.constant 0 : i32
    %c0_i32_0 = arith.constant 0 : i32
    %c0_i32_1 = arith.constant 0 : i32
    return %c0_i32, %c0_i32_0 : i32, i32
  }
  func.func @transform_2(%arg0: i32, %arg1: i32) -> i32 {
    %c0_i32 = arith.constant 0 : i32
    %c0_i32_0 = arith.constant 0 : i32
    return %c0_i32 : i32
  }
  func.func @transform_3(%arg0: i32, %arg1: i32) -> (i32, i32) {
    %c0_i32 = arith.constant 0 : i32
    %c0_i32_0 = arith.constant 0 : i32
    return %arg0, %c0_i32 : i32, i32
  }
}

</mosaic_0001>

<bundles_post_ra>
// kernel: tpu_custom_call.1
= control target key start
LH: loop header
LB: loop body
LE: loop exit
PB: predicated region body
PF: predicated region fallthrough
CT: control target
= control target key end

     0   :  { %9 = vsyncpa [#allocation5], 0  ;;  %s91_s15 = smov [#allocation4]   ;;  %s125_s0 = inlined_call_operand.hbm [shape: f32[8,32], index: 0, kind: input, shape index: {}]   ;;  %s126_s1 = inlined_call_operand.vmem [shape: f32[1,32], index: 1, kind: input, shape index: {}]   ;;  %s127_s2 = inlined_call_operand.<no memory space> [shape: f32[1], index: 2, kind: input, shape index: {}]   ;;  %s128_s3 = inlined_call_operand.vmem [shape: f32[8,1], index: 3, kind: output, shape index: {}]  }
   0x1   :  { %s15_s14 = sshll.u32 %s125_s0, 4  ;;  %s17_s16 = sshll.u32 %s91_s15, 4  ;;  %s16_s14 = int_to_ptr.hbm [resolvable:$true] %s15_s14  ;;  %s18_s16 = int_to_ptr.vmem [resolvable:$true] %s17_s16 }
   0x2   :  { %20 = dma.hbm_to_vmem [thread:$0]  %s16_s14, 128, %s18_s16, [#allocation5]  }
   0x3   :  { %89 = dma.done.wait [#allocation5], 128  }
   0x4   :  { %90 = vsyncadd [#allocation5], 4294967168  ;;  %vm33_vm0 = vcmask 261120   ;;  %v92_v0 = vmov 0.0   ;;  %v36_v1 = vld [vmem:[#allocation4] sm:$0xff]  ;;  %v53_v8 = vstv %s127_s2  ;;  %vm55_vm1 = vcmask 7168  }
   0x5   :  { %34 = vst.msk [vmem:[#allocation2] sm:$0xff] %vm33_vm0, %v92_v0  ;;  %v64_v2 = vld [vmem:[%s126_s1] ss:$0 sm:$0xff] }
   0x6   :  { %v40_v4 = vmul.f32 %v64_v2, %v36_v1 }
   0xc   :  { %v41_v3 = vld [vmem:[#allocation2] sm:$0xff] }
   0xd   :  { %v42_v5 = vadd.f32 %v41_v3, %v40_v4 }
   0xf   :  { %44 = vst.msk [vmem:[#allocation2] sm:$0xff] %vm33_vm0, %v42_v5 }
  0x16   :  { %v48_v6 = vld [vmem:[#allocation2] sm:$0xff] }
  0x17   :  { %v49_v7 = vsel %vm33_vm0, %v48_v6, 0.0 }
  0x18   :  { %50 = vadd.xlane.f32.xlu0 %v49_v7 }
  0x8b   :  { %v51_v9 = vpop.xlane.xlu0 %50 }
  0x8c   :  { %v54_v10 = vadd.f32 %v53_v8, %v51_v9 }
  0x8e   :  { %56 = vst.msk [vmem:[%s128_s3] sm:$0xff] %vm55_vm1, %v54_v10 }
  0x8f   :  { %61 = vsyncpa [#allocation5], 1 }

</bundles_post_ra>
